<compile_context>
chip_gen: v7x
topology: tpu7x:2x2x1
jax: 0.10.0
libtpu: 0.0.40
codegen_flags: <defaults>
</compile_context>

<pallas_src>
import functools

import jax
import jax.numpy as jnp
from jax import lax
from jax.experimental import pallas as pl
from jax.experimental.pallas import tpu as pltpu

LN_EPS = 1e-5  # PyTorch nn.LayerNorm default


def _patch_merging_kernel(x0_ref, x1_ref, g_ref, b_ref, w_ref, o_ref):
    # x0_ref / x1_ref: (th, W2, 2C)  -- ky=0 / ky=1 halves, lane dim = (kx, c)
    # g_ref / b_ref  : (2, 2C)       -- LayerNorm affine, row = ky half
    # w_ref          : (2, 2C, out)  -- reduction weight (bf16), row = ky half
    # o_ref          : (th*W2, out)
    th, w2, c2 = x0_ref.shape
    tm = th * w2
    inv_n = 1.0 / (2.0 * c2)  # 1 / (4*C)

    # Merge (row-pair, w2) -> token dim.  Free relayout when W2 % 8 == 0
    # (sublane-tile aligned); still correct otherwise.
    x0 = x0_ref[...].reshape(tm, c2).astype(jnp.float32)
    x1 = x1_ref[...].reshape(tm, c2).astype(jnp.float32)

    # LayerNorm statistics over the full 4C feature vector (both halves),
    # biased variance, centered formulation (numerically stable).
    mean = (jnp.sum(x0, axis=-1, keepdims=True)
            + jnp.sum(x1, axis=-1, keepdims=True)) * inv_n
    c0 = x0 - mean
    c1 = x1 - mean
    var = (jnp.sum(c0 * c0, axis=-1, keepdims=True)
           + jnp.sum(c1 * c1, axis=-1, keepdims=True)) * inv_n
    inv = lax.rsqrt(var + LN_EPS)

    g0 = g_ref[0:1, :]
    g1 = g_ref[1:2, :]
    b0 = b_ref[0:1, :]
    b1 = b_ref[1:2, :]

    # Affine in f32 on the VPU, single cast to the MXU dtype (bf16).
    y0 = ((c0 * inv) * g0 + b0).astype(w_ref.dtype)
    y1 = ((c1 * inv) * g1 + b1).astype(w_ref.dtype)

    # Linear reduction split across the two ky-halves of the weight; bf16
    # MXU matmuls with f32 accumulation.
    acc = jnp.dot(y0, w_ref[0], preferred_element_type=jnp.float32)
    acc = acc + jnp.dot(y1, w_ref[1], preferred_element_type=jnp.float32)
    o_ref[...] = acc.astype(o_ref.dtype)


@functools.partial(jax.jit, static_argnames=("shape",))
def patch_merging(x, gamma, beta, weight, *, shape):
    """x: (B, H*W, C); gamma/beta: (4C,); weight: (4C, out_dim) [torch W^T].

    Returns (B, (H//2)*(W//2), out_dim), matching the PyTorch PatchMerging.
    """
    B, L, C = x.shape
    H, W = shape
    assert L == H * W and H % 2 == 0 and W % 2 == 0
    H2, W2 = H // 2, W // 2
    C2 = 2 * C
    four_c = 4 * C
    out_dim = weight.shape[1]
    Lo = H2 * W2
    M = B * Lo

    # ---- zero-copy view of x: (b, h2, ky, w2, kx*C + c) -------------------
    # Pure contiguous reshape -> no HBM data movement.
    xv = x.reshape(B, H2, 2, W2, C2)

    # ---- permute params from unfold's (c, ky, kx) order to (ky, kx, c) ----
    # (tiny arrays; negligible cost)
    g2 = gamma.reshape(C, 2, 2).transpose(1, 2, 0).reshape(2, C2)
    g2 = g2.astype(jnp.float32)
    b2 = beta.reshape(C, 2, 2).transpose(1, 2, 0).reshape(2, C2)
    b2 = b2.astype(jnp.float32)
    w2 = weight.reshape(C, 2, 2, out_dim).transpose(1, 2, 0, 3)
    w2 = w2.reshape(2, C2, out_dim).astype(jnp.bfloat16)

    # ---- tile selection: th row-pairs per grid step, th | H2 --------------
    x_bytes = x.dtype.itemsize

    def block_bytes(th_):
        tm_ = th_ * W2
        return (2 * 2 * tm_ * C2 * x_bytes      # two input halves, double-buffered
                + 2 * tm_ * out_dim * 4         # f32 output, double-buffered
                + 2 * 2 * four_c * out_dim)     # bf16 weight, double-buffered

    budget = 12 * 2**20                         # safe even for v7x's 32 MiB scoped VMEM
    th = 1
    for cand in range(H2, 0, -1):
        if H2 % cand == 0 and block_bytes(cand) <= budget:
            th = cand
            break
    nh = H2 // th
    tm = th * W2

    vmem_limit = int(min(64 * 2**20, max(32 * 2**20, 2 * block_bytes(th))))

    cost = pl.CostEstimate(
        flops=2 * M * four_c * out_dim,
        transcendentals=M,  # one rsqrt per output token
        bytes_accessed=int(x.size * x_bytes + w2.size * 2 + M * out_dim * 4),
    )

    out_flat = pl.pallas_call(
        _patch_merging_kernel,
        out_shape=jax.ShapeDtypeStruct((M, out_dim), jnp.float32),
        grid_spec=pltpu.PrefetchScalarGridSpec(
            num_scalar_prefetch=0,
            grid=(B, nh),
            in_specs=[
                # ky = 0 half: (b, h2-band, ky=0, all w2, all (kx,c))
                pl.BlockSpec((None, th, None, W2, C2),
                             lambda b, i: (b, i, 0, 0, 0)),
                # ky = 1 half
                pl.BlockSpec((None, th, None, W2, C2),
                             lambda b, i: (b, i, 1, 0, 0)),
                pl.BlockSpec((2, C2), lambda b, i: (0, 0)),
                pl.BlockSpec((2, C2), lambda b, i: (0, 0)),
                pl.BlockSpec((2, C2, out_dim), lambda b, i: (0, 0, 0)),
            ],
            out_specs=pl.BlockSpec((tm, out_dim),
                                   lambda b, i: (b * nh + i, 0)),
        ),
        compiler_params=pltpu.CompilerParams(
            dimension_semantics=("parallel", "parallel"),
            vmem_limit_bytes=vmem_limit,
        ),
        cost_estimate=cost,
    )(xv, xv, g2, b2, w2)

    return out_flat.reshape(B, Lo, out_dim)


def _reference(x, gamma, beta, weight, *, shape):
    """Pure-JAX f32 reference mirroring the PyTorch module."""
    B, L, C = x.shape
    H, W = shape
    xg = x.reshape(B, H // 2, 2, W // 2, 2, C)
    xg = jnp.transpose(xg, (0, 1, 3, 5, 2, 4)).reshape(B, -1, 4 * C)
    mean = jnp.mean(xg, axis=-1, keepdims=True)
    var = jnp.mean((xg - mean) ** 2, axis=-1, keepdims=True)
    xn = (xg - mean) / jnp.sqrt(var + LN_EPS)
    y = xn * gamma + beta
    return y @ weight


def _run_case(key, B, C, H, W, out_dim):
    kx, kg, kb, kw = jax.random.split(key, 4)
    x = jax.random.normal(kx, (B, H * W, C), dtype=jnp.float32)
    gamma = jax.random.normal(kg, (4 * C,), dtype=jnp.float32) * 0.1 + 1.0
    beta = jax.random.normal(kb, (4 * C,), dtype=jnp.float32) * 0.1
    # torch Linear weight is (out_dim, 4C); we store its transpose (4C, out_dim)
    weight = jax.random.normal(kw, (4 * C, out_dim), dtype=jnp.float32) * 0.05

    out = patch_merging(x, gamma, beta, weight, shape=(H, W))
    jax.block_until_ready(out)

    ref = _reference(x, gamma, beta, weight, shape=(H, W))
    assert out.shape == (B, (H // 2) * (W // 2), out_dim)
    err = float(jnp.max(jnp.abs(out - ref)))
    # bf16 MXU matmul -> loosen tolerance slightly vs. the f32 reference.
    assert jnp.allclose(out, ref, atol=2e-2, rtol=2e-2), f"max abs err {err}"


if __name__ == "__main__":
    root = jax.random.PRNGKey(0)
    # Primary small config: B=2, C(in_dim)=4, H=W=16, out_dim=8
    _run_case(jax.random.fold_in(root, 0), B=2, C=4, H=16, W=16, out_dim=8)
    # Second small config exercising non-square spatial / different dims
    _run_case(jax.random.fold_in(root, 1), B=1, C=8, H=8, W=32, out_dim=16)
    print("KERNEL_OK")
</pallas_src>

<mosaic_0001>
module attributes {stable_mosaic.version = 11 : i64} {
  func.func @_patch_merging_kernel(%arg0: i32, %arg1: i32, %arg2: memref<1x8x1x8x8xf32, #tpu.memory_space<vmem>>, %arg3: memref<1x8x1x8x8xf32, #tpu.memory_space<vmem>>, %arg4: memref<2x8xf32, #tpu.memory_space<vmem>>, %arg5: memref<2x8xf32, #tpu.memory_space<vmem>>, %arg6: memref<2x8x8xbf16, #tpu.memory_space<vmem>>, %arg7: memref<64x8xf32, #tpu.memory_space<vmem>>) attributes {dimension_semantics = [#tpu.dimension_semantics<parallel>, #tpu.dimension_semantics<parallel>], iteration_bounds = array<i64: 2, 1>, scalar_prefetch = 0 : i64, scratch_operands = 0 : i64, tpu.core_type = #tpu.core_type<tc>, window_params = [{transform_indices = @transform_0, window_bounds = array<i64: 1, 8, 1, 8, 8>}, {transform_indices = @transform_1, window_bounds = array<i64: 1, 8, 1, 8, 8>}, {pipeline_mode = #tpu.pipeline_mode<synchronous>, transform_indices = @transform_2, window_bounds = array<i64: 2, 8>}, {pipeline_mode = #tpu.pipeline_mode<synchronous>, transform_indices = @transform_3, window_bounds = array<i64: 2, 8>}, {pipeline_mode = #tpu.pipeline_mode<synchronous>, transform_indices = @transform_4, window_bounds = array<i64: 2, 8, 8>}, {transform_indices = @transform_5, window_bounds = array<i64: 64, 8>}]} {
    %c0 = arith.constant 0 : index
    %c0_0 = arith.constant 0 : index
    %c0_1 = arith.constant 0 : index
    %c0_2 = arith.constant 0 : index
    %c0_3 = arith.constant 0 : index
    %0 = vector.load %arg2[%c0, %c0_0, %c0_1, %c0_2, %c0_3] : memref<1x8x1x8x8xf32, #tpu.memory_space<vmem>>, vector<1x8x1x8x8xf32>
    %1 = vector.shape_cast %0 : vector<1x8x1x8x8xf32> to vector<8x8x8xf32>
    %2 = vector.shape_cast %1 : vector<8x8x8xf32> to vector<64x8xf32>
    %c0_4 = arith.constant 0 : index
    %c0_5 = arith.constant 0 : index
    %c0_6 = arith.constant 0 : index
    %c0_7 = arith.constant 0 : index
    %c0_8 = arith.constant 0 : index
    %3 = vector.load %arg3[%c0_4, %c0_5, %c0_6, %c0_7, %c0_8] : memref<1x8x1x8x8xf32, #tpu.memory_space<vmem>>, vector<1x8x1x8x8xf32>
    %4 = vector.shape_cast %3 : vector<1x8x1x8x8xf32> to vector<8x8x8xf32>
    %5 = vector.shape_cast %4 : vector<8x8x8xf32> to vector<64x8xf32>
    %cst = arith.constant dense<0.000000e+00> : vector<64xf32>
    %6 = vector.multi_reduction <add>, %2, %cst [1] : vector<64x8xf32> to vector<64xf32>
    %7 = vector.shape_cast %6 : vector<64xf32> to vector<64x1xf32>
    %cst_9 = arith.constant dense<0.000000e+00> : vector<64xf32>
    %8 = vector.multi_reduction <add>, %5, %cst_9 [1] : vector<64x8xf32> to vector<64xf32>
    %9 = vector.shape_cast %8 : vector<64xf32> to vector<64x1xf32>
    %10 = arith.addf %7, %9 : vector<64x1xf32>
    %cst_10 = arith.constant 6.250000e-02 : f32
    %11 = vector.broadcast %cst_10 : f32 to vector<64x1xf32>
    %12 = arith.mulf %10, %11 : vector<64x1xf32>
    %13 = vector.broadcast %12 : vector<64x1xf32> to vector<64x8xf32>
    %14 = arith.subf %2, %13 : vector<64x8xf32>
    %15 = vector.broadcast %12 : vector<64x1xf32> to vector<64x8xf32>
    %16 = arith.subf %5, %15 : vector<64x8xf32>
    %17 = arith.mulf %14, %14 : vector<64x8xf32>
    %cst_11 = arith.constant dense<0.000000e+00> : vector<64xf32>
    %18 = vector.multi_reduction <add>, %17, %cst_11 [1] : vector<64x8xf32> to vector<64xf32>
    %19 = vector.shape_cast %18 : vector<64xf32> to vector<64x1xf32>
    %20 = arith.mulf %16, %16 : vector<64x8xf32>
    %cst_12 = arith.constant dense<0.000000e+00> : vector<64xf32>
    %21 = vector.multi_reduction <add>, %20, %cst_12 [1] : vector<64x8xf32> to vector<64xf32>
    %22 = vector.shape_cast %21 : vector<64xf32> to vector<64x1xf32>
    %23 = arith.addf %19, %22 : vector<64x1xf32>
    %cst_13 = arith.constant 6.250000e-02 : f32
    %24 = vector.broadcast %cst_13 : f32 to vector<64x1xf32>
    %25 = arith.mulf %23, %24 : vector<64x1xf32>
    %cst_14 = arith.constant 9.99999974E-6 : f32
    %26 = vector.broadcast %cst_14 : f32 to vector<64x1xf32>
    %27 = arith.addf %25, %26 : vector<64x1xf32>
    %28 = math.rsqrt %27 : vector<64x1xf32>
    %c0_15 = arith.constant 0 : index
    %c0_16 = arith.constant 0 : index
    %29 = vector.load %arg4[%c0_15, %c0_16] : memref<2x8xf32, #tpu.memory_space<vmem>>, vector<1x8xf32>
    %c1 = arith.constant 1 : index
    %c0_17 = arith.constant 0 : index
    %30 = vector.load %arg4[%c1, %c0_17] : memref<2x8xf32, #tpu.memory_space<vmem>>, vector<1x8xf32>
    %c0_18 = arith.constant 0 : index
    %c0_19 = arith.constant 0 : index
    %31 = vector.load %arg5[%c0_18, %c0_19] : memref<2x8xf32, #tpu.memory_space<vmem>>, vector<1x8xf32>
    %c1_20 = arith.constant 1 : index
    %c0_21 = arith.constant 0 : index
    %32 = vector.load %arg5[%c1_20, %c0_21] : memref<2x8xf32, #tpu.memory_space<vmem>>, vector<1x8xf32>
    %33 = vector.broadcast %28 : vector<64x1xf32> to vector<64x8xf32>
    %34 = arith.mulf %14, %33 : vector<64x8xf32>
    %35 = vector.broadcast %29 : vector<1x8xf32> to vector<64x8xf32>
    %36 = arith.mulf %34, %35 : vector<64x8xf32>
    %37 = vector.broadcast %31 : vector<1x8xf32> to vector<64x8xf32>
    %38 = arith.addf %36, %37 : vector<64x8xf32>
    %39 = arith.truncf %38 : vector<64x8xf32> to vector<64x8xbf16>
    %40 = vector.broadcast %28 : vector<64x1xf32> to vector<64x8xf32>
    %41 = arith.mulf %16, %40 : vector<64x8xf32>
    %42 = vector.broadcast %30 : vector<1x8xf32> to vector<64x8xf32>
    %43 = arith.mulf %41, %42 : vector<64x8xf32>
    %44 = vector.broadcast %32 : vector<1x8xf32> to vector<64x8xf32>
    %45 = arith.addf %43, %44 : vector<64x8xf32>
    %46 = arith.truncf %45 : vector<64x8xf32> to vector<64x8xbf16>
    %c0_22 = arith.constant 0 : index
    %c0_23 = arith.constant 0 : index
    %c0_24 = arith.constant 0 : index
    %47 = vector.load %arg6[%c0_22, %c0_23, %c0_24] : memref<2x8x8xbf16, #tpu.memory_space<vmem>>, vector<1x8x8xbf16>
    %48 = vector.shape_cast %47 : vector<1x8x8xbf16> to vector<8x8xbf16>
    %cst_25 = arith.constant dense<0.000000e+00> : vector<64x8xf32>
    %49 = tpu.matmul %39, %48, %cst_25 {dimension_numbers = #tpu.dot_dimension_numbers<[1], [0], [0], [1], [0, 0, 1, 1], [], []>} : vector<64x8xbf16>, vector<8x8xbf16>, vector<64x8xf32> -> vector<64x8xf32>
    %c1_26 = arith.constant 1 : index
    %c0_27 = arith.constant 0 : index
    %c0_28 = arith.constant 0 : index
    %50 = vector.load %arg6[%c1_26, %c0_27, %c0_28] : memref<2x8x8xbf16, #tpu.memory_space<vmem>>, vector<1x8x8xbf16>
    %51 = vector.shape_cast %50 : vector<1x8x8xbf16> to vector<8x8xbf16>
    %cst_29 = arith.constant dense<0.000000e+00> : vector<64x8xf32>
    %52 = tpu.matmul %46, %51, %cst_29 {dimension_numbers = #tpu.dot_dimension_numbers<[1], [0], [0], [1], [0, 0, 1, 1], [], []>} : vector<64x8xbf16>, vector<8x8xbf16>, vector<64x8xf32> -> vector<64x8xf32>
    %53 = arith.addf %49, %52 : vector<64x8xf32>
    %c0_30 = arith.constant 0 : index
    %c0_31 = arith.constant 0 : index
    %54 = vector.load %arg7[%c0_30, %c0_31] : memref<64x8xf32, #tpu.memory_space<vmem>>, vector<64x8xf32>
    tpu.vector_store %arg7[%c0_30, %c0_31], %53 {strides = array<i32>} : memref<64x8xf32, #tpu.memory_space<vmem>>, vector<64x8xf32>,
    return
  }
  func.func @transform_0(%arg0: i32, %arg1: i32) -> (i32, i32, i32, i32, i32) {
    %c0_i32 = arith.constant 0 : i32
    %c0_i32_0 = arith.constant 0 : i32
    %c0_i32_1 = arith.constant 0 : i32
    %c0_i32_2 = arith.constant 0 : i32
    return %arg0, %arg1, %c0_i32, %c0_i32_0, %c0_i32_1 : i32, i32, i32, i32, i32
  }
  func.func @transform_1(%arg0: i32, %arg1: i32) -> (i32, i32, i32, i32, i32) {
    %c1_i32 = arith.constant 1 : i32
    %c0_i32 = arith.constant 0 : i32
    %c0_i32_0 = arith.constant 0 : i32
    %c0_i32_1 = arith.constant 0 : i32
    return %arg0, %arg1, %c1_i32, %c0_i32, %c0_i32_0 : i32, i32, i32, i32, i32
  }
  func.func @transform_2(%arg0: i32, %arg1: i32) -> (i32, i32) {
    %c0_i32 = arith.constant 0 : i32
    %c0_i32_0 = arith.constant 0 : i32
    %c0_i32_1 = arith.constant 0 : i32
    return %c0_i32, %c0_i32_0 : i32, i32
  }
  func.func @transform_3(%arg0: i32, %arg1: i32) -> (i32, i32) {
    %c0_i32 = arith.constant 0 : i32
    %c0_i32_0 = arith.constant 0 : i32
    %c0_i32_1 = arith.constant 0 : i32
    return %c0_i32, %c0_i32_0 : i32, i32
  }
  func.func @transform_4(%arg0: i32, %arg1: i32) -> (i32, i32, i32) {
    %c0_i32 = arith.constant 0 : i32
    %c0_i32_0 = arith.constant 0 : i32
    %c0_i32_1 = arith.constant 0 : i32
    %c0_i32_2 = arith.constant 0 : i32
    return %c0_i32, %c0_i32_0, %c0_i32_1 : i32, i32, i32
  }
  func.func @transform_5(%arg0: i32, %arg1: i32) -> (i32, i32) {
    %c1_i32 = arith.constant 1 : i32
    %0 = arith.muli %arg0, %c1_i32 : i32
    %1 = arith.addi %0, %arg1 : i32
    %c0_i32 = arith.constant 0 : i32
    %c0_i32_0 = arith.constant 0 : i32
    return %1, %c0_i32 : i32, i32
  }
}

</mosaic_0001>

<bundles_post_ra>
// kernel: patch_merging.1
= control target key start
LH: loop header
LB: loop body
LE: loop exit
PB: predicated region body
PF: predicated region fallthrough
CT: control target
= control target key end

     0   :  { %s1149_s18 = smov 0   ;;  %s1151_s19 = smov 0   ;;  %s1491_s0 = inlined_call_operand.vmem [shape: f32[2,8,2,8,8], index: 0, kind: input, shape index: {}, may-alias: {0,1}]   ;;  %s1492_s1 = inlined_call_operand.vmem [shape: f32[2,8,2,8,8], index: 1, kind: input, shape index: {}, may-alias: {0,1}]   ;;  %s1493_s2 = inlined_call_operand.vmem [shape: f32[2,8], index: 2, kind: input, shape index: {}]   ;;  %s1494_s3 = inlined_call_operand.vmem [shape: f32[2,8], index: 3, kind: input, shape index: {}]   ;;  %s1495_s4 = inlined_call_operand.vmem [shape: bf16[2,8,8], index: 4, kind: input, shape index: {}]   ;;  %s1496_s5 = inlined_call_operand.vmem [shape: f32[128,8], index: 5, kind: output, shape index: {}]  }
   0x1   :  { %s1153_s20 = smov 0   ;;  %s1155_s21 = smov 0  }
   0x2   :  { %s1157_s22 = smov 0  }
   0x3 LB: > { %s27_s23 = sadd.s32 1, %s1113_s21  ;;  %p43_p1 = scmp.ne.s32.totalorder %s1105_s19, %s1101_s18  ;;  %s1117_s22 = sphi %s1157_s22, %s15_s22   ;;  %s1113_s21 = sphi %s1155_s21, %s1501_s21   ;;  %s1109_s20 = sphi %s1153_s20, %s1500_s20   ;;  %s1105_s19 = sphi %s1151_s19, %s1499_s19   ;;  %s1101_s18 = sphi %s1149_s18, %s1498_s18  }
   0x4   : > { %p29_p0 = scmp.ge.s32.totalorder %s27_s23, 2  ;;  %p44_p2 = scmp.eq.s32.totalorder %s1117_s22, 0 }
   0x5   : > { %s36_s26 = sadd.s32 1, %s1105_s19  ;;  %p946_p5 = scmp.ge.s32.totalorder %s1117_s22, 2 }
   0x6   : > { %s1503_s23 = smov (%p29_p0, %s27_s23), 0  ;;  %p1180_p3 = por %p44_p2, %p43_p1 }
   0x7   : > { %s31_s25 = ssub.s32 %s1113_s21, %s1503_s23  ;;  %197 = sbr.rel (%p946_p5) target bundleno = 30 (0x1e), region = 28 }
   0x8   : > { %p34_p4 = scmp.eq.s32.totalorder %s31_s25, 0 }
   0xa   : > { %s1188_s27 = scalar_select %p34_p4, %s1105_s19, %s36_s26  }
   0xe   : > { %200 = sbr.rel (!%p1180_p3) target bundleno = 22 (0x16), region = 32  ;;  %s202_s28 = sand.u32 (%p1180_p3), 1, %s1105_s19  }
   0xf   : > { %s981_s29 = sshll.u32 (%p1180_p3), %s1113_s21, 7  ;;  %s947_s30 = sshll.u32 (%p1180_p3), %s202_s28, 6 }
  0x10   : > { %s210_s8 = scalar_lea.vmem (%p1180_p3), %s1491_s0, %s981_s29  ;;  %s204_s9 = scalar_lea.vmem (%p1180_p3), [#allocation2], %s947_s30 }
  0x11   : > { %v252_v0 = vld [vmem:[%s210_s8] sm:$0xff] (%p1180_p3)  ;;  %v254_v1 = vld [vmem:[%s210_s8 + $0x10] sm:$0xff] (%p1180_p3) }
  0x12   : > { %v256_v2 = vld [vmem:[%s210_s8 + $0x20] sm:$0xff] (%p1180_p3)  ;;  %253 = vst [vmem:[%s204_s9] sm:$0xff] (%p1180_p3), %v252_v0  ;;  %255 = vst [vmem:[%s204_s9 + $0x8] sm:$0xff] (%p1180_p3), %v254_v1  ;;  %v258_v3 = vld [vmem:[%s210_s8 + $0x30] sm:$0xff] (%p1180_p3) }
  0x13   : > { %257 = vst [vmem:[%s204_s9 + $0x10] sm:$0xff] (%p1180_p3), %v256_v2  ;;  %v260_v4 = vld [vmem:[%s210_s8 + $0x40] sm:$0xff] (%p1180_p3)  ;;  %v262_v5 = vld [vmem:[%s210_s8 + $0x50] sm:$0xff] (%p1180_p3)  ;;  %259 = vst [vmem:[%s204_s9 + $0x18] sm:$0xff] (%p1180_p3), %v258_v3 }
  0x14   : > { %261 = vst [vmem:[%s204_s9 + $0x20] sm:$0xff] (%p1180_p3), %v260_v4  ;;  %263 = vst [vmem:[%s204_s9 + $0x28] sm:$0xff] (%p1180_p3), %v262_v5  ;;  %v264_v6 = vld [vmem:[%s210_s8 + $0x60] sm:$0xff] (%p1180_p3)  ;;  %v266_v7 = vld [vmem:[%s210_s8 + $0x70] sm:$0xff] (%p1180_p3) }
  0x15   : > { %265 = vst [vmem:[%s204_s9 + $0x30] sm:$0xff] %v264_v6  ;;  %267 = vst [vmem:[%s204_s9 + $0x38] sm:$0xff] %v266_v7 }
  0x16 PF: > { %273 = sbr.rel (!%p1180_p3) target bundleno = 30 (0x1e), region = 70  ;;  %s275_s10 = sand.u32 (%p1180_p3), 1, %s1105_s19  }
  0x17   : > { %s982_s11 = sshll.u32 (%p1180_p3), %s1113_s21, 7  ;;  %s950_s12 = sshll.u32 (%p1180_p3), %s275_s10, 6 }
  0x18   : > { %s882_s15 = scalar_lea.vmem (%p1180_p3), %s1492_s1, %s982_s11  ;;  %s277_s16 = scalar_lea.vmem (%p1180_p3), [#allocation3], %s950_s12 }
  0x19   : > { %v953_v8 = vld [vmem:[%s882_s15 + $0x8] sm:$0xff] (%p1180_p3)  ;;  %v954_v9 = vld [vmem:[%s882_s15 + $0x18] sm:$0xff] (%p1180_p3) }
  0x1a   : > { %v955_v10 = vld [vmem:[%s882_s15 + $0x28] sm:$0xff] (%p1180_p3)  ;;  %327 = vst [vmem:[%s277_s16] sm:$0xff] (%p1180_p3), %v953_v8  ;;  %329 = vst [vmem:[%s277_s16 + $0x8] sm:$0xff] (%p1180_p3), %v954_v9  ;;  %v956_v11 = vld [vmem:[%s882_s15 + $0x38] sm:$0xff] (%p1180_p3) }
  0x1b   : > { %331 = vst [vmem:[%s277_s16 + $0x10] sm:$0xff] (%p1180_p3), %v955_v10  ;;  %v957_v12 = vld [vmem:[%s882_s15 + $0x48] sm:$0xff] (%p1180_p3)  ;;  %v958_v13 = vld [vmem:[%s882_s15 + $0x58] sm:$0xff] (%p1180_p3)  ;;  %333 = vst [vmem:[%s277_s16 + $0x18] sm:$0xff] (%p1180_p3), %v956_v11 }
  0x1c   : > { %335 = vst [vmem:[%s277_s16 + $0x20] sm:$0xff] (%p1180_p3), %v957_v12  ;;  %337 = vst [vmem:[%s277_s16 + $0x28] sm:$0xff] (%p1180_p3), %v958_v13  ;;  %v959_v14 = vld [vmem:[%s882_s15 + $0x68] sm:$0xff] (%p1180_p3)  ;;  %v960_v15 = vld [vmem:[%s882_s15 + $0x78] sm:$0xff] (%p1180_p3) }
  0x1d   : > { %339 = vst [vmem:[%s277_s16 + $0x30] sm:$0xff] %v959_v14  ;;  %341 = vst [vmem:[%s277_s16 + $0x38] sm:$0xff] %v960_v15 }
  0x1e PF: > { %p961_p6 = scmp.ge.s32.totalorder %s1117_s22, 1  ;;  %p346_p7 = scmp.lt.s32.totalorder %s1117_s22, 3 }
  0x20   : > { %p347_p8 = pnand %p961_p6, %p346_p7 }
  0x21   : > { %s353_s17 = sand.u32 (!%p347_p8), 1, %s1101_s18   ;;  %vm419_vm0 = vcmask (!%p347_p8), 64512   ;;  %vm687_vm1 = vcmask (!%p347_p8), 1043456   ;;  %s964_s14 = sshll.u32 (!%p347_p8), %s1109_s20, 3 }
  0x22   : > { %350 = sbr.rel (%p347_p8) target bundleno = 608 (0x260), region = 108  ;;  %s962_s24 = sshll.u32 (!%p347_p8), %s353_s17, 6 }
  0x23   : > { %s1208_s25 = scalar_lea.vmem (!%p347_p8), [#allocation3], %s962_s24  ;;  %s1211_s26 = scalar_lea.vmem (!%p347_p8), [#allocation2], %s962_s24 }
  0x24   : > { %v411_v16 = vld [vmem:[%s1208_s25] sm:$0xff] (!%p347_p8)  ;;  %v412_v18 = vld [vmem:[%s1208_s25 + $0x8] sm:$0xff] (!%p347_p8)  ;;  %v1221_v24 = vld [vmem:[%s1211_s26 + $0x18] sm:$0xff] (!%p347_p8)  ;;  %p396_p9 = scmp.lt.s32.totalorder (!%p347_p8), %s964_s14, 15 }
  0x25   : > { %v403_v17 = vld [vmem:[%s1211_s26] sm:$0xff] (!%p347_p8)  ;;  %v444_v19 = vsel (!%p347_p8), %vm419_vm0, %v411_v16, 0.0  ;;  %v404_v21 = vld [vmem:[%s1211_s26 + $0x8] sm:$0xff] (!%p347_p8)  ;;  %v447_v22 = vsel (!%p347_p8), %vm419_vm0, %v412_v18, 0.0  ;;  %v1224_v25 = vld [vmem:[%s1211_s26 + $0x10] sm:$0xff] (!%p347_p8)  ;;  %v429_v26 = vsel (!%p347_p8), %vm419_vm0, %v1221_v24, 0.0 }
  0x26   : > { %v420_v20 = vsel (!%p347_p8), %vm419_vm0, %v403_v17, 0.0  ;;  %445 = vadd.xlane.f32.xlu1 (!%p347_p8), %v444_v19  ;;  %v423_v23 = vsel (!%p347_p8), %vm419_vm0, %v404_v21, 0.0  ;;  %v426_v27 = vsel (!%p347_p8), %vm419_vm0, %v1224_v25, 0.0  ;;  %v1231_v28 = vld [vmem:[%s1208_s25 + $0x18] sm:$0xff] (!%p347_p8)  ;;  %v1234_v29 = vld [vmem:[%s1208_s25 + $0x10] sm:$0xff] (!%p347_p8)  ;;  %v1241_v32 = vld [vmem:[%s1211_s26 + $0x28] sm:$0xff] (!%p347_p8) }
  0x27   : > { %421 = vadd.xlane.f32.xlu0 (!%p347_p8), %v420_v20  ;;  %v453_v30 = vsel (!%p347_p8), %vm419_vm0, %v1231_v28, 0.0  ;;  %v450_v31 = vsel (!%p347_p8), %vm419_vm0, %v1234_v29, 0.0  ;;  %v1244_v33 = vld [vmem:[%s1211_s26 + $0x20] sm:$0xff] (!%p347_p8)  ;;  %v435_v34 = vsel (!%p347_p8), %vm419_vm0, %v1241_v32, 0.0  ;;  %v1251_v36 = vld [vmem:[%s1208_s25 + $0x28] sm:$0xff] (!%p347_p8)  ;;  %v1261_v40 = vld [vmem:[%s1211_s26 + $0x38] sm:$0xff] (!%p347_p8) }
  0x28   : > { %v432_v35 = vsel (!%p347_p8), %vm419_vm0, %v1244_v33, 0.0  ;;  %v1254_v37 = vld [vmem:[%s1208_s25 + $0x20] sm:$0xff] (!%p347_p8)  ;;  %v459_v38 = vsel (!%p347_p8), %vm419_vm0, %v1251_v36, 0.0  ;;  %v1264_v41 = vld [vmem:[%s1211_s26 + $0x30] sm:$0xff] (!%p347_p8)  ;;  %v441_v42 = vsel (!%p347_p8), %vm419_vm0, %v1261_v40, 0.0  ;;  %v1271_v44 = vld [vmem:[%s1208_s25 + $0x38] sm:$0xff] (!%p347_p8) }
  0x29   : > { %v456_v39 = vsel %vm419_vm0, %v1254_v37, 0.0  ;;  %v438_v43 = vsel %vm419_vm0, %v1264_v41, 0.0  ;;  %v1274_v45 = vld [vmem:[%s1208_s25 + $0x30] sm:$0xff]  ;;  %v465_v46 = vsel %vm419_vm0, %v1271_v44, 0.0  ;;  %s1505_s14 = smov (!%p396_p9, %s964_s14), 15 }
  0x2a   : > { %448 = vadd.xlane.f32.xlu1 %v447_v22  ;;  %v462_v47 = vsel %vm419_vm0, %v1274_v45, 0.0  ;;  %s965_s15 = sshll.u32 %s1505_s14, 3 }
  0x2b   : > { %424 = vadd.xlane.f32.xlu0 %v423_v23  ;;  %s1458_s24 = scalar_lea.vmem %s1496_s5, %s965_s15 }
  0x2e   : > { %430 = vadd.xlane.f32.xlu1 %v429_v26 }
  0x2f   : > { %427 = vadd.xlane.f32.xlu0 %v426_v27 }
  0x32   : > { %454 = vadd.xlane.f32.xlu1 %v453_v30 }
  0x33   : > { %451 = vadd.xlane.f32.xlu0 %v450_v31 }
  0x36   : > { %436 = vadd.xlane.f32.xlu1 %v435_v34 }
  0x37   : > { %433 = vadd.xlane.f32.xlu0 %v432_v35 }
  0x3a   : > { %460 = vadd.xlane.f32.xlu1 %v459_v38 }
  0x3b   : > { %457 = vadd.xlane.f32.xlu0 %v456_v39 }
  0x3e   : > { %442 = vadd.xlane.f32.xlu1 %v441_v42 }
  0x3f   : > { %439 = vadd.xlane.f32.xlu0 %v438_v43 }
  0x42   : > { %466 = vadd.xlane.f32.xlu1 %v465_v46 }
  0x43   : > { %463 = vadd.xlane.f32.xlu0 %v462_v47 }
  0xb3   : > { %v446_v48 = vpop.xlane.xlu1 %445 }
  0xb4   : > { %v422_v49 = vpop.xlane.xlu0 %421 }
  0xb5   : > { %v468_v50 = vadd.f32 %v446_v48, %v422_v49 }
  0xb7   : > { %v476_v51 = vmul.f32 0.0625, %v468_v50  ;;  %v449_v52 = vpop.xlane.xlu1 %448 }
  0xb8   : > { %v425_v53 = vpop.xlane.xlu0 %424 }
  0xb9   : > { %v1280_v54 = vsub.f32 %v403_v17, %v476_v51  ;;  %v1282_v55 = vsub.f32 %v411_v16, %v476_v51  ;;  %v469_v56 = vadd.f32 %v449_v52, %v425_v53 }
  0xbb   : > { %v477_v57 = vmul.f32 0.0625, %v469_v56  ;;  %v500_v58 = vmul.f32 %v1280_v54, %v1280_v54  ;;  %v431_v59 = vpop.xlane.xlu1 %430  ;;  %v532_v0 = vmul.f32 %v1282_v55, %v1282_v55 }
  0xbc   : > { %v428_v60 = vpop.xlane.xlu0 %427 }
  0xbd   : > { %v1286_v61 = vsub.f32 %v404_v21, %v477_v57  ;;  %v1288_v62 = vsub.f32 %v412_v18, %v477_v57  ;;  %v508_v63 = vsel %vm419_vm0, %v500_v58, 0.0  ;;  %v540_v7 = vsel %vm419_vm0, %v532_v0, 0.0 }
  0xbe   : > { %509 = vadd.xlane.f32.xlu0 %v508_v63 }
  0xbf   : > { %v501_v1 = vmul.f32 %v1286_v61, %v1286_v61  ;;  %v455_v2 = vpop.xlane.xlu1 %454  ;;  %v533_v4 = vmul.f32 %v1288_v62, %v1288_v62 }
  0xc0   : > { %v452_v3 = vpop.xlane.xlu0 %451  ;;  %v471_v5 = vadd.f32 %v455_v2, %v431_v59 }
  0xc1   : > { %v470_v6 = vadd.f32 %v452_v3, %v428_v60  ;;  %v511_v8 = vsel %vm419_vm0, %v501_v1, 0.0  ;;  %v543_v13 = vsel %vm419_vm0, %v533_v4, 0.0  ;;  %v970_v4 = vld [vmem:[%s1495_s4 + $0x4] sm:$0xf] }
  0xc2   : > { %541 = vadd.xlane.f32.xlu0 %v540_v7  ;;  %512 = vadd.xlane.f32.xlu1 %v511_v8  ;;  %v479_v9 = vmul.f32 0.0625, %v471_v5  ;;  %v672_v5 = vld [vmem:[%s1495_s4] sm:$0xf] }
  0xc3   : > { %v478_v10 = vmul.f32 0.0625, %v470_v6  ;;  %v437_v11 = vpop.xlane.xlu1 %436  ;;  %1021 = vmatprep.subr.msk.bf16.mxu1 %vm687_vm1, %v970_v4  ;;  %1022 = vmatprep.subr.msk.bf16.mxu0 %vm687_vm1, %v672_v5  ;;  %v689_v6 = vsel %vm687_vm1, %v970_v4, 0  ;;  %v769_v7 = vsel %vm687_vm1, %v672_v5, 0 }
  0xc4   : > { %v434_v12 = vpop.xlane.xlu0 %433  ;;  %v1301_v14 = vsub.f32 %v1221_v24, %v479_v9  ;;  %v1304_v15 = vsub.f32 %v1231_v28, %v479_v9  ;;  %994 = vmatpush3.bf16.msra.mxu1 %v689_v6  ;;  %1004 = vmatpush3.bf16.msra.mxu0 %v769_v7 }
  0xc5   : > { %v1307_v16 = vsub.f32 %v1224_v25, %v478_v10  ;;  %v1310_v17 = vsub.f32 %v1234_v29, %v478_v10 }
  0xc6   : > { %544 = vadd.xlane.f32.xlu1 %v543_v13  ;;  %v503_v18 = vmul.f32 %v1301_v14, %v1301_v14  ;;  %v535_v22 = vmul.f32 %v1304_v15, %v1304_v15 }
  0xc7   : > { %v502_v19 = vmul.f32 %v1307_v16, %v1307_v16  ;;  %v461_v20 = vpop.xlane.xlu1 %460  ;;  %v534_v23 = vmul.f32 %v1310_v17, %v1310_v17 }
  0xc8   : > { %v458_v21 = vpop.xlane.xlu0 %457  ;;  %v473_v24 = vadd.f32 %v461_v20, %v437_v11  ;;  %v517_v26 = vsel %vm419_vm0, %v503_v18, 0.0  ;;  %v549_v34 = vsel %vm419_vm0, %v535_v22, 0.0 }
  0xc9   : > { %v472_v25 = vadd.f32 %v458_v21, %v434_v12  ;;  %v514_v27 = vsel %vm419_vm0, %v502_v19, 0.0  ;;  %v546_v35 = vsel %vm419_vm0, %v534_v23, 0.0 }
  0xca   : > { %518 = vadd.xlane.f32.xlu1 %v517_v26  ;;  %515 = vadd.xlane.f32.xlu0 %v514_v27  ;;  %v481_v28 = vmul.f32 0.0625, %v473_v24 }
  0xcb   : > { %v480_v29 = vmul.f32 0.0625, %v472_v25  ;;  %v443_v30 = vpop.xlane.xlu1 %442 }
  0xcc   : > { %v440_v31 = vpop.xlane.xlu0 %439  ;;  %v1325_v38 = vsub.f32 %v1241_v32, %v481_v28  ;;  %v1328_v39 = vsub.f32 %v1251_v36, %v481_v28 }
  0xcd   : > { %v1331_v42 = vsub.f32 %v1244_v33, %v480_v29  ;;  %v1334_v43 = vsub.f32 %v1254_v37, %v480_v29 }
  0xce   : > { %550 = vadd.xlane.f32.xlu1 %v549_v34  ;;  %547 = vadd.xlane.f32.xlu0 %v546_v35  ;;  %v505_v46 = vmul.f32 %v1325_v38, %v1325_v38  ;;  %v537_v36 = vmul.f32 %v1328_v39, %v1328_v39 }
  0xcf   : > { %v504_v47 = vmul.f32 %v1331_v42, %v1331_v42  ;;  %v467_v48 = vpop.xlane.xlu1 %466  ;;  %v536_v33 = vmul.f32 %v1334_v43, %v1334_v43 }
  0xd0   : > { %v464_v32 = vpop.xlane.xlu0 %463  ;;  %v475_v49 = vadd.f32 %v467_v48, %v443_v30  ;;  %v523_v37 = vsel %vm419_vm0, %v505_v46, 0.0  ;;  %v555_v56 = vsel %vm419_vm0, %v537_v36, 0.0  ;;  %v1388_v36 = vld [vmem:[%s1493_s2] ss:$0 sm:$0xff] }
  0xd1   : > { %v474_v50 = vadd.f32 %v464_v32, %v440_v31  ;;  %v520_v51 = vsel %vm419_vm0, %v504_v47, 0.0  ;;  %v552_v57 = vsel %vm419_vm0, %v536_v33, 0.0  ;;  %v1383_v32 = vld [vmem:[%s1493_s2 + $0x1] ss:$0 sm:$0xff] }
  0xd2   : > { %524 = vadd.xlane.f32.xlu1 %v523_v37  ;;  %521 = vadd.xlane.f32.xlu0 %v520_v51  ;;  %v483_v52 = vmul.f32 0.0625, %v475_v49 }
  0xd3   : > { %v482_v53 = vmul.f32 0.0625, %v474_v50 }
  0xd4   : > { %v1349_v58 = vsub.f32 %v1261_v40, %v483_v52  ;;  %v1352_v59 = vsub.f32 %v1271_v44, %v483_v52 }
  0xd5   : > { %v1355_v60 = vsub.f32 %v1264_v41, %v482_v53  ;;  %v1358_v63 = vsub.f32 %v1274_v45, %v482_v53 }
  0xd6   : > { %556 = vadd.xlane.f32.xlu1 %v555_v56  ;;  %553 = vadd.xlane.f32.xlu0 %v552_v57  ;;  %v507_v0 = vmul.f32 %v1349_v58, %v1349_v58  ;;  %v539_v44 = vmul.f32 %v1352_v59, %v1352_v59 }
  0xd7   : > { %v506_v1 = vmul.f32 %v1355_v60, %v1355_v60  ;;  %v538_v41 = vmul.f32 %v1358_v63, %v1358_v63 }
  0xd8   : > { %v529_v40 = vsel %vm419_vm0, %v507_v0, 0.0  ;;  %v561_v45 = vsel %vm419_vm0, %v539_v44, 0.0  ;;  %v1397_v0 = vld [vmem:[%s1494_s3 + $0x1] ss:$0 sm:$0xff] }
  0xd9   : > { %v526_v2 = vsel %vm419_vm0, %v506_v1, 0.0  ;;  %v558_v3 = vsel %vm419_vm0, %v538_v41, 0.0  ;;  %v1402_v1 = vld [vmem:[%s1494_s3] ss:$0 sm:$0xff] }
  0xda   : > { %530 = vadd.xlane.f32.xlu1 %v529_v40  ;;  %527 = vadd.xlane.f32.xlu0 %v526_v2 }
  0xde   : > { %562 = vadd.xlane.f32.xlu1 %v561_v45  ;;  %559 = vadd.xlane.f32.xlu0 %v558_v3 }
 0x14b   : > { %v510_v8 = vpop.xlane.xlu0 %509 }
 0x14f   : > { %v513_v9 = vpop.xlane.xlu1 %512  ;;  %v542_v10 = vpop.xlane.xlu0 %541 }
 0x150   : > { %v564_v11 = vadd.f32 %v542_v10, %v510_v8 }
 0x152   : > { %v572_v12 = vmul.f32 0.0625, %v564_v11 }
 0x153   : > { %v545_v13 = vpop.xlane.xlu1 %544 }
 0x154   : > { %v580_v18 = vadd.f32 1e-05, %v572_v12  ;;  %v565_v19 = vadd.f32 %v545_v13, %v513_v9 }
 0x156   : > { %1063 = vrsqrt.f32 %v580_v18  ;;  %v573_v20 = vmul.f32 0.0625, %v565_v19 }
 0x157   : > { %v519_v21 = vpop.xlane.xlu1 %518  ;;  %v516_v22 = vpop.xlane.xlu0 %515 }
 0x158   : > { %v581_v23 = vadd.f32 1e-05, %v573_v20 }
 0x15a   : > { %1065 = vrsqrt.f32 %v581_v23 }
 0x15b   : > { %v551_v24 = vpop.xlane.xlu1 %550  ;;  %v548_v25 = vpop.xlane.xlu0 %547 }
 0x15c   : > { %v567_v26 = vadd.f32 %v551_v24, %v519_v21  ;;  %v566_v27 = vadd.f32 %v548_v25, %v516_v22 }
 0x15e   : > { %v575_v28 = vmul.f32 0.0625, %v567_v26  ;;  %v574_v29 = vmul.f32 0.0625, %v566_v27 }
 0x15f   : > { %v525_v30 = vpop.xlane.xlu1 %524  ;;  %v522_v31 = vpop.xlane.xlu0 %521 }
 0x160   : > { %v1064_v34 = vpop.eup %1063  ;;  %v583_v35 = vadd.f32 1e-05, %v575_v28  ;;  %v582_v46 = vadd.f32 1e-05, %v574_v29 }
 0x161   : > { %v636_v47 = vmul.f32 %v1064_v34, %v1282_v55  ;;  %v600_v48 = vmul.f32 %v1064_v34, %v1280_v54 }
 0x162   : > { %1067 = vrsqrt.f32 %v583_v35 }
 0x163   : > { %1069 = vrsqrt.f32 %v582_v46  ;;  %v557_v33 = vpop.xlane.xlu1 %556  ;;  %v554_v49 = vpop.xlane.xlu0 %553  ;;  %v648_v54 = vmul.f32 %v1383_v32, %v636_v47  ;;  %v612_v53 = vmul.f32 %v1388_v36, %v600_v48 }
 0x164   : > { %v1066_v50 = vpop.eup %1065  ;;  %v569_v37 = vadd.f32 %v557_v33, %v525_v30  ;;  %v568_v51 = vadd.f32 %v554_v49, %v522_v31 }
 0x165   : > { %v637_v55 = vmul.f32 %v1066_v50, %v1288_v62  ;;  %v601_v52 = vmul.f32 %v1066_v50, %v1286_v61  ;;  %v660_v45 = vadd.f32 %v1397_v0, %v648_v54  ;;  %v624_v4 = vadd.f32 %v1402_v1, %v612_v53 }
 0x166   : > { %v577_v56 = vmul.f32 0.0625, %v569_v37  ;;  %v576_v57 = vmul.f32 0.0625, %v568_v51 }
 0x167   : > { %v531_v40 = vpop.xlane.xlu1 %530  ;;  %v528_v62 = vpop.xlane.xlu0 %527  ;;  %v649_v2 = vmul.f32 %v1383_v32, %v637_v55  ;;  %v613_v61 = vmul.f32 %v1388_v36, %v601_v52 }
 0x168   : > { %v585_v44 = vadd.f32 1e-05, %v577_v56  ;;  %v584_v41 = vadd.f32 1e-05, %v576_v57 }
 0x169   : > { %v661_v3 = vadd.f32 %v1397_v0, %v649_v2  ;;  %v625_v5 = vadd.f32 %v1402_v1, %v613_v61 }
 0x16a   : > { %1071 = vrsqrt.f32 %v585_v44 }
 0x16b   : > { %1073 = vrsqrt.f32 %v584_v41  ;;  %v563_v6 = vpop.xlane.xlu1 %562  ;;  %v560_v7 = vpop.xlane.xlu0 %559  ;;  %v668_v8 = vpack.c.bf16 %v661_v3, %v660_v45  ;;  %v632_v9 = vpack.c.bf16 %v625_v5, %v624_v4 }
 0x16c   : > { %v1068_v10 = vpop.eup %1067  ;;  %v571_v11 = vadd.f32 %v563_v6, %v531_v40  ;;  %v570_v12 = vadd.f32 %v560_v7, %v528_v62 }
 0x16d   : > { %v1070_v13 = vpop.eup %1069  ;;  %v603_v18 = vmul.f32 %v1068_v10, %v1301_v14  ;;  %v639_v19 = vmul.f32 %v1068_v10, %v1304_v15  ;;  %995 = vmatprep.mubr.msk.bf16.mxu1 %vm419_vm0, %v668_v8  ;;  %1005 = vmatprep.mubr.msk.bf16.mxu0 %vm419_vm0, %v632_v9 }
 0x16e   : > { %v602_v20 = vmul.f32 %v1070_v13, %v1307_v16  ;;  %v638_v21 = vmul.f32 %v1070_v13, %v1310_v17  ;;  %v579_v22 = vmul.f32 0.0625, %v571_v11  ;;  %v578_v23 = vmul.f32 0.0625, %v570_v12 }
 0x16f   : > { %v651_v24 = vmul.f32 %v1383_v32, %v639_v19  ;;  %v615_v25 = vmul.f32 %v1388_v36, %v603_v18 }
 0x170   : > { %v587_v26 = vadd.f32 1e-05, %v579_v22  ;;  %v586_v27 = vadd.f32 1e-05, %v578_v23  ;;  %v650_v14 = vmul.f32 %v1383_v32, %v638_v21  ;;  %v614_v15 = vmul.f32 %v1388_v36, %v602_v20 }
 0x171   : > { %v663_v28 = vadd.f32 %v1397_v0, %v651_v24  ;;  %v627_v29 = vadd.f32 %v1402_v1, %v615_v25 }
 0x172   : > { %1075 = vrsqrt.f32 %v587_v26  ;;  %v662_v16 = vadd.f32 %v1397_v0, %v650_v14  ;;  %v626_v17 = vadd.f32 %v1402_v1, %v614_v15 }
 0x173   : > { %1077 = vrsqrt.f32 %v586_v27 }
 0x174   : > { %v1072_v30 = vpop.eup %1071  ;;  %v669_v31 = vpack.c.bf16 %v663_v28, %v662_v16  ;;  %v633_v34 = vpack.c.bf16 %v627_v29, %v626_v17 }
 0x175   : > { %v1074_v35 = vpop.eup %1073  ;;  %v605_v46 = vmul.f32 %v1072_v30, %v1325_v38  ;;  %v641_v47 = vmul.f32 %v1072_v30, %v1328_v39 }
 0x176   : > { %v604_v48 = vmul.f32 %v1074_v35, %v1331_v42  ;;  %v640_v33 = vmul.f32 %v1074_v35, %v1334_v43  ;;  %996 = vmatmul.mubr.msk.bf16.vlgmr.msra.gmra.mrb[0].mxu1 %vm419_vm0, %v669_v31  ;;  %1006 = vmatmul.mubr.msk.bf16.vlgmr.msra.gmra.mrb[0].mxu0 %vm419_vm0, %v633_v34 }
 0x177   : > { %v653_v49 = vmul.f32 %v1383_v32, %v641_v47  ;;  %v617_v50 = vmul.f32 %v1388_v36, %v605_v46 }
 0x178   : > { %v652_v37 = vmul.f32 %v1383_v32, %v640_v33  ;;  %v616_v51 = vmul.f32 %v1388_v36, %v604_v48 }
 0x179   : > { %v665_v38 = vadd.f32 %v1397_v0, %v653_v49  ;;  %v629_v39 = vadd.f32 %v1402_v1, %v617_v50 }
 0x17a   : > { %v664_v42 = vadd.f32 %v1397_v0, %v652_v37  ;;  %v628_v43 = vadd.f32 %v1402_v1, %v616_v51 }
 0x17c   : > { %v1076_v55 = vpop.eup %1075  ;;  %v670_v54 = vpack.c.bf16 %v665_v38, %v664_v42  ;;  %v634_v52 = vpack.c.bf16 %v629_v39, %v628_v43 }
 0x17d   : > { %v1078_v53 = vpop.eup %1077  ;;  %v607_v56 = vmul.f32 %v1076_v55, %v1349_v58  ;;  %v643_v57 = vmul.f32 %v1076_v55, %v1352_v59 }
 0x17e   : > { %v606_v40 = vmul.f32 %v1078_v53, %v1355_v60  ;;  %v642_v62 = vmul.f32 %v1078_v53, %v1358_v63  ;;  %999 = vmatprep.mubr.msk.bf16.mxu1 %vm419_vm0, %v670_v54  ;;  %1009 = vmatprep.mubr.msk.bf16.mxu0 %vm419_vm0, %v634_v52 }
 0x17f   : > { %v655_v2 = vmul.f32 %v1383_v32, %v643_v57  ;;  %v619_v61 = vmul.f32 %v1388_v36, %v607_v56 }
 0x180   : > { %v654_v44 = vmul.f32 %v1383_v32, %v642_v62  ;;  %v618_v41 = vmul.f32 %v1388_v36, %v606_v40 }
 0x181   : > { %v667_v58 = vadd.f32 %v1397_v0, %v655_v2  ;;  %v631_v59 = vadd.f32 %v1402_v1, %v619_v61 }
 0x182   : > { %v666_v60 = vadd.f32 %v1397_v0, %v654_v44  ;;  %v630_v63 = vadd.f32 %v1402_v1, %v618_v41 }
 0x184   : > { %v671_v45 = vpack.c.bf16 %v667_v58, %v666_v60  ;;  %v635_v3 = vpack.c.bf16 %v631_v59, %v630_v63 }
 0x186   : > { %1000 = vmatmul.mubr.msk.bf16.gmra.mrb[4].mxu1 %vm419_vm0, %v671_v45  ;;  %1010 = vmatmul.mubr.msk.bf16.gmra.mrb[4].mxu0 %vm419_vm0, %v635_v3 }
 0x249   : > { %v997_v32 = vpop.f32.mrb[0].mxu1  ;;  %v1007_v36 = vpop.f32.mrb[0].mxu0 }
 0x24a   : > { %v814_v0 = vadd.f32 %v1007_v36, %v997_v32  ;;  %v725_v1 = vpop.f32.mrb[1].mxu1  ;;  %v805_v4 = vpop.f32.mrb[1].mxu0 }
 0x24b   : > { %v806_v5 = vadd.f32 %v805_v4, %v725_v1  ;;  %v998_v6 = vpop.f32.mrb[2].mxu1  ;;  %v1008_v7 = vpop.f32.mrb[2].mxu0 }
 0x24c   : > { %838 = vst.msk [vmem:[%s1458_s24 + $0x10] sm:$0xff] %vm419_vm0, %v814_v0  ;;  %v817_v8 = vadd.f32 %v1008_v7, %v998_v6  ;;  %v728_v9 = vpop.f32.mrb[3].mxu1  ;;  %v808_v10 = vpop.f32.mrb[3].mxu0 }
 0x24d   : > { %836 = vst.msk [vmem:[%s1458_s24] sm:$0xff] %vm419_vm0, %v806_v5  ;;  %v809_v11 = vadd.f32 %v808_v10, %v728_v9 }
 0x24e   : > { %839 = vst.msk [vmem:[%s1458_s24 + $0x18] sm:$0xff] %vm419_vm0, %v817_v8 }
 0x24f   : > { %837 = vst.msk [vmem:[%s1458_s24 + $0x8] sm:$0xff] %vm419_vm0, %v809_v11 }
 0x259   : > { %v1001_v12 = vpop.f32.mrb[4].mxu1  ;;  %v1011_v13 = vpop.f32.mrb[4].mxu0 }
 0x25a   : > { %v830_v18 = vadd.f32 %v1011_v13, %v1001_v12  ;;  %v741_v19 = vpop.f32.mrb[5].mxu1  ;;  %v821_v20 = vpop.f32.mrb[5].mxu0 }
 0x25b   : > { %v822_v21 = vadd.f32 %v821_v20, %v741_v19  ;;  %v1002_v22 = vpop.f32.mrb[6].mxu1  ;;  %v1012_v23 = vpop.f32.mrb[6].mxu0 }
 0x25c   : > { %842 = vst.msk [vmem:[%s1458_s24 + $0x30] sm:$0xff] %vm419_vm0, %v830_v18  ;;  %v833_v24 = vadd.f32 %v1012_v23, %v1002_v22  ;;  %v744_v25 = vpop.f32.mrb[7].mxu1  ;;  %v824_v26 = vpop.f32.mrb[7].mxu0 }
 0x25d   : > { %840 = vst.msk [vmem:[%s1458_s24 + $0x20] sm:$0xff] %vm419_vm0, %v822_v21  ;;  %v825_v27 = vadd.f32 %v824_v26, %v744_v25 }
 0x25e   : > { %843 = vst.msk [vmem:[%s1458_s24 + $0x38] sm:$0xff] %vm419_vm0, %v833_v24 }
 0x25f   : > { %841 = vst.msk [vmem:[%s1458_s24 + $0x28] sm:$0xff] %vm419_vm0, %v825_v27 }
 0x260 PF: > { %s15_s22 = sadd.s32 1, %s1117_s22   ;;  %s1498_s18 = smov %s1105_s19 }
 0x261   : > { %p12_p10 = scmp.ge.s32.totalorder %s15_s22, 4   ;;  %s1499_s19 = smov %s1188_s27 }
 0x262   : > { %s1500_s20 = smov %s1113_s21  ;;  %s1501_s21 = smov %s1503_s23 }
 0x263   :  { %14 = sbr.rel (!%p12_p10) target bundleno = 3 (0x3), region = 160 }

</bundles_post_ra>
